<compile_context>
chip_gen: v7x
topology: tpu7x:2x2x1
jax: 0.10.0
libtpu: 0.0.40
codegen_flags: <defaults>
</compile_context>

<pallas_src>
import jax
import jax.numpy as jnp
from jax.experimental import pallas as pl
from jax.experimental.pallas import tpu as pltpu


MID_DIM = 256   # fixed by the PyTorch module
SUB_M = 128     # row-tile granularity (MXU / sublane friendly)


def _round_up(v, m):
    return ((v + m - 1) // m) * m


def _vmem_budget_bytes():
    """~80% of physical VMEM: ~52 MiB on v7x, ~102 MiB on v5e/v6e."""
    cap = 128 * 1024 * 1024
    try:
        cap = int(pltpu.get_tpu_info().vmem_capacity_bytes)
    except Exception:
        pass
    return int(cap * 0.8)


def projector_kernel(x_ref, w1_ref, b1_ref, w2_ref, b2_ref, o_ref):
    # x_ref : [tile_m, in_dim]  f32 (streamed)   w1_ref: [in_dim, MID]   f32 (resident)
    # b1_ref: [1, MID]          f32 (resident)   w2_ref: [MID, out_dim]  f32 (resident)
    # b2_ref: [1, out_dim]      f32 (resident)   o_ref : [tile_m, out_dim] out_dtype
    x = x_ref[...].astype(jnp.bfloat16)      # VPU cast; free while mem-bound
    w1 = w1_ref[...].astype(jnp.bfloat16)
    w2 = w2_ref[...].astype(jnp.bfloat16)

    # Linear 1 (bf16 MXU, f32 accumulation) + bias + ReLU.
    h = jnp.dot(x, w1, preferred_element_type=jnp.float32) + b1_ref[...]
    h = jnp.maximum(h, 0.0).astype(jnp.bfloat16)
    # Linear 2 + bias.
    y = jnp.dot(h, w2, preferred_element_type=jnp.float32) + b2_ref[...]
    o_ref[...] = y.astype(o_ref.dtype)


def _choose_tile_m(N, in_dim, out_dim, out_isz, budget):
    if N <= SUB_M:
        return int(N)                         # single block; equals the full row dim
    # Resident operands (f32 weights + biases, double-buffered by default).
    resident = 2 * ((in_dim + out_dim) * MID_DIM * 4 + (MID_DIM + out_dim) * 4)
    # Bytes that scale with tile_m: double-buffered x (f32) and output tiles,
    # plus live intermediates (bf16 x/h copies, f32 h and y).
    per_row = (2 * in_dim * 4 + 2 * out_dim * out_isz
               + in_dim * 2 + MID_DIM * (4 + 2) + out_dim * 4)
    avail = max(budget - resident, 4 * 1024 * 1024)
    tile_m = min(2048, avail // per_row)
    # Keep >= ~4 grid steps so the pipeline overlaps and v7x's 2 TCs both work.
    tile_m = min(tile_m, _round_up(pl.cdiv(N, 4), SUB_M))
    tile_m = max(SUB_M, (tile_m // SUB_M) * SUB_M)
    return int(tile_m)


def projector_forward(x, w1, b1, w2, b2, *, out_dtype=jnp.float32):
    """x: [..., in_dim] (f32). Weights stored [in, out] (transposed vs torch);
    biases [1, out]. Returns [..., out_dim] in `out_dtype`."""
    in_dim = x.shape[-1]
    assert w1.shape == (in_dim, MID_DIM)
    assert w2.shape[0] == MID_DIM
    out_dim = w2.shape[1]

    lead_shape = x.shape[:-1]
    x2d = x.reshape(-1, in_dim)
    N = x2d.shape[0]
    b1_r = b1.reshape(1, MID_DIM)
    b2_r = b2.reshape(1, out_dim)

    out_isz = jnp.dtype(out_dtype).itemsize
    budget = _vmem_budget_bytes()
    tile_m = _choose_tile_m(N, in_dim, out_dim, out_isz, budget)

    # Scoped-VMEM request: generous but always below the physical budget.
    est = (2 * tile_m * in_dim * 4
           + 2 * tile_m * out_dim * out_isz
           + 2 * ((in_dim + out_dim) * MID_DIM * 4 + (MID_DIM + out_dim) * 4)
           + tile_m * (in_dim * 2 + MID_DIM * 6 + out_dim * 4))
    vmem_limit = int(min(max(2 * est, 32 * 1024 * 1024), budget))

    grid = (pl.cdiv(N, tile_m),)
    out = pl.pallas_call(
        projector_kernel,
        out_shape=jax.ShapeDtypeStruct((N, out_dim), out_dtype),
        grid_spec=pltpu.PrefetchScalarGridSpec(
            num_scalar_prefetch=0,
            grid=grid,
            in_specs=[
                pl.BlockSpec((tile_m, in_dim), lambda i: (i, 0)),     # x tile (streamed)
                # Constant index_maps -> fetched once, resident across the grid.
                pl.BlockSpec((in_dim, MID_DIM), lambda i: (0, 0)),    # w1
                pl.BlockSpec((1, MID_DIM), lambda i: (0, 0)),         # b1
                pl.BlockSpec((MID_DIM, out_dim), lambda i: (0, 0)),   # w2
                pl.BlockSpec((1, out_dim), lambda i: (0, 0)),         # b2
            ],
            out_specs=pl.BlockSpec((tile_m, out_dim), lambda i: (i, 0)),
        ),
        compiler_params=pltpu.CompilerParams(
            dimension_semantics=("parallel",),
            vmem_limit_bytes=vmem_limit,
        ),
    )(x2d, w1, b1_r, w2, b2_r)

    return out.reshape(*lead_shape, out_dim)


def init_params(key, in_dim, out_dim):
    """Deterministic synthetic init matching nn.Linear shapes (stored transposed)."""
    k1, k2, k3, k4 = jax.random.split(key, 4)
    bound1 = 1.0 / jnp.sqrt(in_dim)
    bound2 = 1.0 / jnp.sqrt(MID_DIM)
    w1 = jax.random.uniform(k1, (in_dim, MID_DIM), jnp.float32, -bound1, bound1)
    b1 = jax.random.uniform(k2, (1, MID_DIM), jnp.float32, -bound1, bound1)
    w2 = jax.random.uniform(k3, (MID_DIM, out_dim), jnp.float32, -bound2, bound2)
    b2 = jax.random.uniform(k4, (1, out_dim), jnp.float32, -bound2, bound2)
    return w1, b1, w2, b2


if __name__ == "__main__":
    key = jax.random.PRNGKey(0)
    kx, kp = jax.random.split(key)

    # Small shapes: batch=2, seq=8 -> 16 "token" rows, in_dim=32, out_dim=64
    batch, seq, in_dim, out_dim = 2, 8, 32, 64
    x = jax.random.normal(kx, (batch, seq, in_dim), jnp.float32)
    w1, b1, w2, b2 = init_params(kp, in_dim, out_dim)

    y = projector_forward(x, w1, b1, w2, b2)
    jax.block_until_ready(y)
    y2d = y.reshape(batch * seq, out_dim)

    # References.
    x2d = x.reshape(batch * seq, in_dim)
    # (a) pure-f32 reference = exact PyTorch-module math (loose tol: bf16 MXU inputs)
    ref_f32 = jnp.maximum(x2d @ w1 + b1, 0.0) @ w2 + b2
    # (b) bf16-matched reference (same casts as the kernel; tight tol)
    h = jnp.dot(x2d.astype(jnp.bfloat16), w1.astype(jnp.bfloat16),
                preferred_element_type=jnp.float32) + b1
    h = jnp.maximum(h, 0.0).astype(jnp.bfloat16)
    ref_bf16 = jnp.dot(h, w2.astype(jnp.bfloat16),
                       preferred_element_type=jnp.float32) + b2

    assert y2d.shape == (batch * seq, out_dim)
    assert jnp.allclose(y2d, ref_bf16, atol=5e-3, rtol=5e-3), "mismatch vs bf16 reference"
    assert jnp.allclose(y2d, ref_f32, atol=5e-2, rtol=5e-2), "mismatch vs f32 reference"

    print("KERNEL_OK")
</pallas_src>

<mosaic_0001>
module attributes {stable_mosaic.version = 11 : i64} {
  func.func @projector_kernel(%arg0: i32, %arg1: memref<16x32xf32, #tpu.memory_space<vmem>>, %arg2: memref<32x256xf32, #tpu.memory_space<vmem>>, %arg3: memref<1x256xf32, #tpu.memory_space<vmem>>, %arg4: memref<256x64xf32, #tpu.memory_space<vmem>>, %arg5: memref<1x64xf32, #tpu.memory_space<vmem>>, %arg6: memref<16x64xf32, #tpu.memory_space<vmem>>) attributes {dimension_semantics = [#tpu.dimension_semantics<parallel>], iteration_bounds = array<i64: 1>, scalar_prefetch = 0 : i64, scratch_operands = 0 : i64, tpu.core_type = #tpu.core_type<tc>, window_params = [{transform_indices = @transform_0, window_bounds = array<i64: 16, 32>}, {pipeline_mode = #tpu.pipeline_mode<synchronous>, transform_indices = @transform_1, window_bounds = array<i64: 32, 256>}, {pipeline_mode = #tpu.pipeline_mode<synchronous>, transform_indices = @transform_2, window_bounds = array<i64: 1, 256>}, {pipeline_mode = #tpu.pipeline_mode<synchronous>, transform_indices = @transform_3, window_bounds = array<i64: 256, 64>}, {pipeline_mode = #tpu.pipeline_mode<synchronous>, transform_indices = @transform_4, window_bounds = array<i64: 1, 64>}, {transform_indices = @transform_5, window_bounds = array<i64: 16, 64>}]} {
    %c0 = arith.constant 0 : index
    %c0_0 = arith.constant 0 : index
    %0 = vector.load %arg1[%c0, %c0_0] : memref<16x32xf32, #tpu.memory_space<vmem>>, vector<16x32xf32>
    %1 = arith.truncf %0 : vector<16x32xf32> to vector<16x32xbf16>
    %c0_1 = arith.constant 0 : index
    %c0_2 = arith.constant 0 : index
    %2 = vector.load %arg2[%c0_1, %c0_2] : memref<32x256xf32, #tpu.memory_space<vmem>>, vector<32x256xf32>
    %3 = arith.truncf %2 : vector<32x256xf32> to vector<32x256xbf16>
    %c0_3 = arith.constant 0 : index
    %c0_4 = arith.constant 0 : index
    %4 = vector.load %arg4[%c0_3, %c0_4] : memref<256x64xf32, #tpu.memory_space<vmem>>, vector<256x64xf32>
    %5 = arith.truncf %4 : vector<256x64xf32> to vector<256x64xbf16>
    %cst = arith.constant dense<0.000000e+00> : vector<16x256xf32>
    %6 = tpu.matmul %1, %3, %cst {dimension_numbers = #tpu.dot_dimension_numbers<[1], [0], [0], [1], [0, 0, 1, 1], [], []>} : vector<16x32xbf16>, vector<32x256xbf16>, vector<16x256xf32> -> vector<16x256xf32>
    %c0_5 = arith.constant 0 : index
    %c0_6 = arith.constant 0 : index
    %7 = vector.load %arg3[%c0_5, %c0_6] : memref<1x256xf32, #tpu.memory_space<vmem>>, vector<1x256xf32>
    %8 = vector.broadcast %7 : vector<1x256xf32> to vector<16x256xf32>
    %9 = arith.addf %6, %8 : vector<16x256xf32>
    %cst_7 = arith.constant 0.000000e+00 : f32
    %10 = vector.broadcast %cst_7 : f32 to vector<16x256xf32>
    %11 = arith.maximumf %9, %10 : vector<16x256xf32>
    %12 = arith.truncf %11 : vector<16x256xf32> to vector<16x256xbf16>
    %cst_8 = arith.constant dense<0.000000e+00> : vector<16x64xf32>
    %13 = tpu.matmul %12, %5, %cst_8 {dimension_numbers = #tpu.dot_dimension_numbers<[1], [0], [0], [1], [0, 0, 1, 1], [], []>} : vector<16x256xbf16>, vector<256x64xbf16>, vector<16x64xf32> -> vector<16x64xf32>
    %c0_9 = arith.constant 0 : index
    %c0_10 = arith.constant 0 : index
    %14 = vector.load %arg5[%c0_9, %c0_10] : memref<1x64xf32, #tpu.memory_space<vmem>>, vector<1x64xf32>
    %15 = vector.broadcast %14 : vector<1x64xf32> to vector<16x64xf32>
    %16 = arith.addf %13, %15 : vector<16x64xf32>
    %c0_11 = arith.constant 0 : index
    %c0_12 = arith.constant 0 : index
    %17 = vector.load %arg6[%c0_11, %c0_12] : memref<16x64xf32, #tpu.memory_space<vmem>>, vector<16x64xf32>
    tpu.vector_store %arg6[%c0_11, %c0_12], %16 {strides = array<i32>} : memref<16x64xf32, #tpu.memory_space<vmem>>, vector<16x64xf32>,
    return
  }
  func.func @transform_0(%arg0: i32) -> (i32, i32) {
    %c0_i32 = arith.constant 0 : i32
    %c0_i32_0 = arith.constant 0 : i32
    return %arg0, %c0_i32 : i32, i32
  }
  func.func @transform_1(%arg0: i32) -> (i32, i32) {
    %c0_i32 = arith.constant 0 : i32
    %c0_i32_0 = arith.constant 0 : i32
    %c0_i32_1 = arith.constant 0 : i32
    return %c0_i32, %c0_i32_0 : i32, i32
  }
  func.func @transform_2(%arg0: i32) -> (i32, i32) {
    %c0_i32 = arith.constant 0 : i32
    %c0_i32_0 = arith.constant 0 : i32
    %c0_i32_1 = arith.constant 0 : i32
    return %c0_i32, %c0_i32_0 : i32, i32
  }
  func.func @transform_3(%arg0: i32) -> (i32, i32) {
    %c0_i32 = arith.constant 0 : i32
    %c0_i32_0 = arith.constant 0 : i32
    %c0_i32_1 = arith.constant 0 : i32
    return %c0_i32, %c0_i32_0 : i32, i32
  }
  func.func @transform_4(%arg0: i32) -> (i32, i32) {
    %c0_i32 = arith.constant 0 : i32
    %c0_i32_0 = arith.constant 0 : i32
    %c0_i32_1 = arith.constant 0 : i32
    return %c0_i32, %c0_i32_0 : i32, i32
  }
  func.func @transform_5(%arg0: i32) -> (i32, i32) {
    %c0_i32 = arith.constant 0 : i32
    %c0_i32_0 = arith.constant 0 : i32
    return %arg0, %c0_i32 : i32, i32
  }
}

</mosaic_0001>

<bundles_post_ra>
// kernel: tpu_custom_call.1
= control target key start
LH: loop header
LB: loop body
LE: loop exit
PB: predicated region body
PF: predicated region fallthrough
CT: control target
= control target key end

     0   :  { %v269_v7 = vmov 0   ;;  %vm97_vm0 = vcmask 261120   ;;  %s447_s0 = inlined_call_operand.vmem [shape: f32[16,32], index: 0, kind: input, shape index: {}]   ;;  %s448_s1 = inlined_call_operand.vmem [shape: f32[32,256], index: 1, kind: input, shape index: {}]   ;;  %s449_s2 = inlined_call_operand.vmem [shape: f32[1,256], index: 2, kind: input, shape index: {}]   ;;  %s450_s3 = inlined_call_operand.vmem [shape: f32[256,64], index: 3, kind: input, shape index: {}]   ;;  %s451_s4 = inlined_call_operand.vmem [shape: f32[1,64], index: 4, kind: input, shape index: {}]   ;;  %s452_s5 = inlined_call_operand.hbm [shape: f32[16,64], index: 5, kind: output, shape index: {}]  }
   0x1   :  { %v26_v0 = vld [vmem:[%s448_s1 + $0x8] sm:$0xff]  ;;  %v28_v1 = vld [vmem:[%s448_s1 + $0x18] sm:$0xff]  ;;  %v25_v2 = vld [vmem:[%s448_s1] sm:$0xff]  ;;  %133 = vmatprep.mubr.bf16.mxu0 %v269_v7 }
   0x2   :  { %v34_v3 = vpack.c.bf16 %v28_v1, %v26_v0  ;;  %v27_v4 = vld [vmem:[%s448_s1 + $0x10] sm:$0xff]  ;;  %v30_v5 = vld [vmem:[%s448_s1 + $0x28] sm:$0xff]  ;;  %v32_v6 = vld [vmem:[%s448_s1 + $0x38] sm:$0xff] }
   0x3   :  { %v33_v8 = vpack.c.bf16 %v27_v4, %v25_v2  ;;  %v36_v9 = vpack.c.bf16 %v32_v6, %v30_v5  ;;  %v29_v10 = vld [vmem:[%s448_s1 + $0x20] sm:$0xff]  ;;  %v31_v11 = vld [vmem:[%s448_s1 + $0x30] sm:$0xff]  ;;  %v23_v13 = vld [vmem:[%s447_s0 + $0x8] sm:$0xff] }
   0x4   :  { %v22_v12 = vld [vmem:[%s447_s0] sm:$0xff]  ;;  %101 = vmatprep.subr.bf16.mxu0 %v34_v3  ;;  %v54_v15 = vld [vmem:[%s450_s3 + $0x88] sm:$0xff]  ;;  %v35_v16 = vpack.c.bf16 %v31_v11, %v29_v10  ;;  %v55_v20 = vld [vmem:[%s450_s3 + $0x90] sm:$0xff] }
   0x5   :  { %v53_v14 = vld [vmem:[%s450_s3 + $0x80] sm:$0xff]  ;;  %102 = vmatpush1.bf16.msra.mxu0 %v33_v8  ;;  %v38_v19 = vld [vmem:[%s450_s3 + $0x8] sm:$0xff]  ;;  %v56_v22 = vld [vmem:[%s450_s3 + $0x98] sm:$0xff]  ;;  %v24_v28 = vpack.c.bf16 %v23_v13, %v22_v12 }
   0x6   :  { %v77_v17 = vpack.c.bf16 %v54_v15, %v53_v14  ;;  %v37_v18 = vld [vmem:[%s450_s3] sm:$0xff]  ;;  %103 = vmatprep.subr.bf16.mxu0 %v36_v9  ;;  %v39_v23 = vld [vmem:[%s450_s3 + $0x10] sm:$0xff]  ;;  %v40_v24 = vld [vmem:[%s450_s3 + $0x18] sm:$0xff]  ;;  %v78_v25 = vpack.c.bf16 %v56_v22, %v55_v20 }
   0x7   :  { %v69_v21 = vpack.c.bf16 %v38_v19, %v37_v18  ;;  %v57_v26 = vld [vmem:[%s450_s3 + $0xa0] sm:$0xff]  ;;  %v58_v27 = vld [vmem:[%s450_s3 + $0xa8] sm:$0xff]  ;;  %v70_v29 = vpack.c.bf16 %v40_v24, %v39_v23  ;;  %v59_v33 = vld [vmem:[%s450_s3 + $0xb0] sm:$0xff] }
   0x8   :  { %219 = vmatprep.subr.bf16.mxu1 %v77_v17  ;;  %v79_v30 = vpack.c.bf16 %v58_v27, %v57_v26  ;;  %v41_v31 = vld [vmem:[%s450_s3 + $0x20] sm:$0xff]  ;;  %v42_v32 = vld [vmem:[%s450_s3 + $0x28] sm:$0xff]  ;;  %v60_v34 = vld [vmem:[%s450_s3 + $0xb8] sm:$0xff] }
   0x9   :  { %220 = vmatpush3.bf16.msra.mxu1 %v69_v21  ;;  %104 = vmatpush1.bf16.msra.mxu0 %v35_v16  ;;  %v71_v35 = vpack.c.bf16 %v42_v32, %v41_v31 }
   0xa   :  { %221 = vmatprep.subr.bf16.mxu1 %v78_v25 }
   0xc   :  { %217 = vmatmul.mubr.msk.bf16.vlgmr.msra.gmra.mrb[0].mxu0 %vm97_vm0, %v24_v28 }
   0xd   :  { %222 = vmatpush3.bf16.msra.mxu1 %v70_v29 }
   0xe   :  { %10 = vsyncpa [#allocation3], 0  ;;  %223 = vmatprep.subr.bf16.mxu1 %v79_v30  ;;  %v80_v36 = vpack.c.bf16 %v60_v34, %v59_v33  ;;  %v43_v37 = vld [vmem:[%s450_s3 + $0x30] sm:$0xff]  ;;  %v44_v38 = vld [vmem:[%s450_s3 + $0x38] sm:$0xff]  ;;  %v87_v0 = vlaneseq  ;;  %s270_s23 = smov [#allocation2]   ;;  %vm198_vm1 = vcmask 523264  }
   0xf   :  { %v61_v39 = vld [vmem:[%s450_s3 + $0xc0] sm:$0xff]  ;;  %v62_v40 = vld [vmem:[%s450_s3 + $0xc8] sm:$0xff]  ;;  %v72_v41 = vpack.c.bf16 %v44_v38, %v43_v37  ;;  %v63_v45 = vld [vmem:[%s450_s3 + $0xd0] sm:$0xff]  ;;  %s206_s24 = sshll.u32 %s270_s23, 4  ;;  %s207_s24 = int_to_ptr.vmem [resolvable:$true] %s206_s24 }
  0x10   :  { %v81_v42 = vpack.c.bf16 %v62_v40, %v61_v39  ;;  %v45_v43 = vld [vmem:[%s450_s3 + $0x40] sm:$0xff]  ;;  %v46_v44 = vld [vmem:[%s450_s3 + $0x48] sm:$0xff]  ;;  %v64_v46 = vld [vmem:[%s450_s3 + $0xd8] sm:$0xff]  ;;  %v88_v1 = vshrl.u32 %v87_v0, 7  ;;  %s245_s25 = scalar_lea.vmem %s207_s24, 256  ;;  %p250_p1 = scmp.lt.s32.totalorder %s207_s24, %s207_s24 }
  0x11   :  { %224 = vmatpush3.bf16.msra.mxu1 %v71_v35  ;;  %v73_v47 = vpack.c.bf16 %v46_v44, %v45_v43  ;;  %v82_v48 = vpack.c.bf16 %v64_v46, %v63_v45  ;;  %v47_v49 = vld [vmem:[%s450_s3 + $0x50] sm:$0xff]  ;;  %v48_v50 = vld [vmem:[%s450_s3 + $0x58] sm:$0xff]  ;;  %v65_v52 = vld [vmem:[%s450_s3 + $0xe0] sm:$0xff]  ;;  %p246_p0 = scmp.ne.s32.totalorder %s207_s24, %s245_s25  ;;  %p251_p2 = scmp.lt.s32.totalorder %s245_s25, %s245_s25 }
  0x12   :  { %225 = vmatprep.subr.bf16.mxu1 %v80_v36  ;;  %v74_v51 = vpack.c.bf16 %v48_v50, %v47_v49  ;;  %v66_v53 = vld [vmem:[%s450_s3 + $0xe8] sm:$0xff]  ;;  %v49_v55 = vld [vmem:[%s450_s3 + $0x60] sm:$0xff]  ;;  %v67_v58 = vld [vmem:[%s450_s3 + $0xf0] sm:$0xff]  ;;  %v89_v2 = vsub.s32 0, %v88_v1  ;;  %v93_v4 = vsub.s32 1, %v88_v1 }
  0x13   :  { %v83_v54 = vpack.c.bf16 %v66_v53, %v65_v52  ;;  %v50_v56 = vld [vmem:[%s450_s3 + $0x68] sm:$0xff]  ;;  %v68_v59 = vld [vmem:[%s450_s3 + $0xf8] sm:$0xff]  ;;  %v51_v61 = vld [vmem:[%s450_s3 + $0x70] sm:$0xff]  ;;  %p252_p3 = por %p251_p2, %p250_p1 }
  0x14   :  { %v75_v57 = vpack.c.bf16 %v50_v56, %v49_v55  ;;  %v84_v60 = vpack.c.bf16 %v68_v59, %v67_v58  ;;  %v52_v62 = vld [vmem:[%s450_s3 + $0x78] sm:$0xff]  ;;  %v85_v3 = vld [vmem:[%s449_s2] sm:$0x3] }
  0x15   :  { %226 = vmatpush3.bf16.msra.mxu1 %v72_v41  ;;  %v76_v63 = vpack.c.bf16 %v52_v62, %v51_v61  ;;  %v90_v5 = vrot.slane %v85_v3, %v89_v2  ;;  %v94_v6 = vrot.slane %v85_v3, %v93_v4  ;;  %v218_v22 = vld [vmem:[%s451_s4] ss:$0 sm:$0xff]  ;;  %p253_p4 = pnand %p252_p3, %p246_p0 }
  0x16   :  { %227 = vmatprep.subr.bf16.mxu1 %v81_v42 }
  0x19   :  { %228 = vmatpush3.bf16.msra.mxu1 %v73_v47 }
  0x1a   :  { %229 = vmatprep.subr.bf16.mxu1 %v82_v48 }
  0x1d   :  { %230 = vmatpush3.bf16.msra.mxu1 %v74_v51 }
  0x1e   :  { %231 = vmatprep.subr.bf16.mxu1 %v83_v54 }
  0x21   :  { %232 = vmatpush3.bf16.msra.mxu1 %v75_v57 }
  0x22   :  { %233 = vmatprep.subr.bf16.mxu1 %v84_v60 }
  0x25   :  { %234 = vmatpush3.bf16.msra.mxu1 %v76_v63 }
  0xdf   :  { %v135_v7 = vpop.f32.mrb[0].mxu0 }
  0xe0   :  { %v136_v8 = vadd.f32 %v135_v7, %v90_v5  ;;  %v137_v9 = vpop.f32.mrb[1].mxu0 }
  0xe1   :  { %v138_v10 = vadd.f32 %v137_v9, %v94_v6  ;;  %v139_v11 = vpop.f32.mrb[2].mxu0 }
  0xe2   :  { %v140_v12 = vadd.f32 %v139_v11, %v90_v5  ;;  %v141_v13 = vpop.f32.mrb[3].mxu0  ;;  %v144_v15 = vmax.f32 %v136_v8, 0.0 }
  0xe3   :  { %v142_v14 = vadd.f32 %v141_v13, %v94_v6  ;;  %v145_v17 = vmax.f32 %v138_v10, 0.0 }
  0xe4   :  { %v146_v16 = vmax.f32 %v140_v12, 0.0 }
  0xe5   :  { %v147_v18 = vmax.f32 %v142_v14, 0.0 }
  0xe6   :  { %v148_v19 = vpack.c.bf16 %v146_v16, %v144_v15 }
  0xe7   :  { %v149_v20 = vpack.c.bf16 %v147_v18, %v145_v17 }
  0xe9   :  { %189 = vmatprep.mubr.bf16.mxu1 %v149_v20 }
  0xea   :  { %190 = vmatmul.mubr.bf16.vlgmr.msra.gmra.mrb[0].mxu1 %v148_v19 }
 0x1bd   :  { %v235_v21 = vpop.f32.mrb[0].mxu1 }
 0x1be   :  { %v236_v23 = vpop.f32.mrb[1].mxu1 }
 0x1bf   :  { %v237_v24 = vadd.f32 %v236_v23, %v235_v21  ;;  %v238_v25 = vpop.f32.mrb[2].mxu1 }
 0x1c0   :  { %v239_v26 = vpop.f32.mrb[3].mxu1 }
 0x1c1   :  { %v192_v27 = vadd.f32 %v237_v24, %v218_v22  ;;  %v240_v28 = vadd.f32 %v239_v26, %v238_v25 }
 0x1c3   :  { %199 = vst.msk [vmem:[#allocation2] sm:$0xff] %vm198_vm1, %v192_v27  ;;  %v195_v29 = vadd.f32 %v240_v28, %v218_v22 }
 0x1c5   :  { %200 = vst.msk [vmem:[#allocation2 + $0x8] sm:$0xff] %vm198_vm1, %v195_v29 }
 0x1c6   :  { %256 = shalt.err (!%p253_p4)
}
 0x1c7   :  { %s257_s27 = scalar_lea.hbm %s452_s5, 256 }
 0x1c8   :  { %p258_p5 = scmp.ne.s32.totalorder %s452_s5, %s257_s27  ;;  %p261_p6 = scmp.lt.u32.totalorder %s257_s27, %s452_s5 }
 0x1ca   :  { %p263_p7 = pnand %p261_p6, %p258_p5 }
 0x1cc   :  { %266 = shalt.err (!%p263_p7)
}
 0x1cd   :  { %s271_s7 = smov 128   ;;  %s272_s8 = smov 8  }
 0x1ce   :  { %212 = dma.vmem_to_hbm [thread:$0]  %s207_s24, 256, %s452_s5, [#allocation3], %s271_s7, %s271_s7, %s272_s8  }
 0x1cf   :  { %267 = dma.done.wait [#allocation3], 256  }
 0x1d0   :  { %268 = vsyncadd [#allocation3], 4294967040 }
 0x1d1   :  { %216 = vsyncpa [#allocation3], 1 }

</bundles_post_ra>
